<compile_context>
chip_gen: v7x
topology: tpu7x:2x2x1
jax: 0.10.0
libtpu: 0.0.40
codegen_flags: <defaults>
</compile_context>

<pallas_src>
import functools

import jax
import jax.numpy as jnp
from jax.experimental import pallas as pl
from jax.experimental.pallas import tpu as pltpu

LANE = 128
SUBLANE = 8


def _round_up(x, m):
    return (x + m - 1) // m * m


def _cifar10_head_kernel(x_ref, w_ref, b_ref, o_ref):
    # Pure MXU matmul (normalization already folded into w/b) + bias add.
    o_ref[...] = (
        jnp.dot(x_ref[...], w_ref[...], preferred_element_type=jnp.float32)
        + b_ref[...]
    )


def prepare_cifar10_head(weight, bias, mean_c, std_c, H, W, num_classes_pad=LANE):
    """One-time constant prep: fold per-channel mean/std into weight/bias and
    pad the class dimension to a lane-dense width.

    weight: (C*H*W, num_classes), bias: (num_classes,), mean_c/std_c: (C,)
    Returns (w_pad, b_pad, num_classes).
    """
    D, num_classes = weight.shape
    weight = weight.astype(jnp.float32)
    bias = bias.astype(jnp.float32)

    # Flat per-feature mean / inv_std matching torch's (C,1,1) broadcast.
    mean_flat = jnp.repeat(mean_c.astype(jnp.float32), H * W)          # (D,)
    inv_std_flat = 1.0 / jnp.repeat(std_c.astype(jnp.float32), H * W)  # (D,)

    # Fold:  ((x - mean) * inv_std) @ W + b  ==  x @ W' + b'
    w_fold = weight * inv_std_flat[:, None]                            # (D, nc)
    b_fold = bias - (mean_flat * inv_std_flat) @ weight                # (nc,)

    # Lane-dense padding of the class dimension (full 128-lane stores).
    nc_pad = _round_up(max(num_classes, num_classes_pad), LANE)
    w_pad = jnp.zeros((D, nc_pad), jnp.float32).at[:, :num_classes].set(w_fold)
    b_pad = jnp.zeros((1, nc_pad), jnp.float32).at[:, :num_classes].set(b_fold)
    return w_pad, b_pad, num_classes


@functools.partial(jax.jit, static_argnames=("num_classes",))
def cifar10_model_forward(x_nchw, w_pad, b_pad, *, num_classes):
    """x_nchw: (N, C, H, W). w_pad: (D, NC_PAD), b_pad: (1, NC_PAD)."""
    N, C, H, W = x_nchw.shape
    D = C * H * W
    nc_pad = w_pad.shape[1]

    # Flatten image; pad batch (only if needed) to a sublane-aligned tile.
    x_flat = x_nchw.reshape(N, D).astype(jnp.float32)
    tm = min(256, _round_up(N, SUBLANE))          # batch tile (multiple of 8)
    n_pad = _round_up(N, tm)                      # waste is always < tm rows
    if n_pad != N:
        x_flat = jnp.pad(x_flat, ((0, n_pad - N), (0, 0)))

    grid = (n_pad // tm,)
    flops = 2 * n_pad * D * nc_pad
    bytes_accessed = 4 * (n_pad * D + D * nc_pad + nc_pad + n_pad * nc_pad)

    out = pl.pallas_call(
        _cifar10_head_kernel,
        out_shape=jax.ShapeDtypeStruct((n_pad, nc_pad), jnp.float32),
        grid=grid,
        in_specs=[
            pl.BlockSpec((tm, D), lambda i: (i, 0)),        # x tile (double-buffered)
            pl.BlockSpec((D, nc_pad), lambda i: (0, 0)),    # weight, VMEM-resident
            pl.BlockSpec((1, nc_pad), lambda i: (0, 0)),    # bias, VMEM-resident
        ],
        out_specs=pl.BlockSpec((tm, nc_pad), lambda i: (i, 0)),
        compiler_params=pltpu.CompilerParams(
            dimension_semantics=("parallel",),
        ),
        cost_estimate=pl.CostEstimate(
            flops=flops, transcendentals=0, bytes_accessed=bytes_accessed
        ),
    )(x_flat, w_pad, b_pad)

    # Strip batch/class padding.
    return out[:N, :num_classes]


if __name__ == "__main__":
    # CIFAR-10-like small shapes: batch=2, 3 channels (required by the (3,1,1)
    # mean/std view), spatial 16x16, 10 output classes.
    N, C, H, W = 2, 3, 16, 16
    NUM_CLASSES = 10
    D = C * H * W

    key = jax.random.PRNGKey(0)
    kx, kw, kb = jax.random.split(key, 3)

    x = jax.random.uniform(kx, (N, C, H, W), dtype=jnp.float32)          # pixels in [0,1]
    weight = jax.random.normal(kw, (D, NUM_CLASSES), dtype=jnp.float32) * 0.02
    bias = jax.random.normal(kb, (NUM_CLASSES,), dtype=jnp.float32) * 0.01

    mean_c = jnp.array([0.5, 0.5, 0.5], dtype=jnp.float32)
    std_c = jnp.array([0.5, 0.5, 0.5], dtype=jnp.float32)

    # One-time constant preparation (fold normalization + pad to lane width).
    w_pad, b_pad, nc = prepare_cifar10_head(weight, bias, mean_c, std_c, H, W)

    logits = cifar10_model_forward(x, w_pad, b_pad, num_classes=nc)
    jax.block_until_ready(logits)

    # Pure-JAX reference check (same semantics as the torch forward).
    x_norm = (x - mean_c.reshape(1, 3, 1, 1)) / std_c.reshape(1, 3, 1, 1)
    ref = x_norm.reshape(N, D) @ weight + bias
    assert logits.shape == (N, NUM_CLASSES)
    assert jnp.allclose(logits, ref, atol=2e-4, rtol=2e-4), "mismatch vs reference"

    print("KERNEL_OK")
</pallas_src>

<mosaic_0001>
module attributes {stable_mosaic.version = 11 : i64} {
  func.func @_cifar10_head_kernel(%arg0: i32, %arg1: memref<8x768xf32, #tpu.memory_space<vmem>>, %arg2: memref<768x128xf32, #tpu.memory_space<vmem>>, %arg3: memref<1x128xf32, #tpu.memory_space<vmem>>, %arg4: memref<8x128xf32, #tpu.memory_space<vmem>>) attributes {dimension_semantics = [#tpu.dimension_semantics<parallel>], iteration_bounds = array<i64: 1>, scalar_prefetch = 0 : i64, scratch_operands = 0 : i64, tpu.core_type = #tpu.core_type<tc>, window_params = [{transform_indices = @transform_0, window_bounds = array<i64: 8, 768>}, {pipeline_mode = #tpu.pipeline_mode<synchronous>, transform_indices = @transform_1, window_bounds = array<i64: 768, 128>}, {pipeline_mode = #tpu.pipeline_mode<synchronous>, transform_indices = @transform_2, window_bounds = array<i64: 1, 128>}, {transform_indices = @transform_3, window_bounds = array<i64: 8, 128>}]} {
    %c0 = arith.constant 0 : index
    %c0_0 = arith.constant 0 : index
    %0 = vector.load %arg1[%c0, %c0_0] : memref<8x768xf32, #tpu.memory_space<vmem>>, vector<8x768xf32>
    %c0_1 = arith.constant 0 : index
    %c0_2 = arith.constant 0 : index
    %1 = vector.load %arg2[%c0_1, %c0_2] : memref<768x128xf32, #tpu.memory_space<vmem>>, vector<768x128xf32>
    %cst = arith.constant dense<0.000000e+00> : vector<8x128xf32>
    %2 = tpu.matmul %0, %1, %cst {dimension_numbers = #tpu.dot_dimension_numbers<[1], [0], [0], [1], [0, 0, 1, 1], [], []>} : vector<8x768xf32>, vector<768x128xf32>, vector<8x128xf32> -> vector<8x128xf32>
    %c0_3 = arith.constant 0 : index
    %c0_4 = arith.constant 0 : index
    %3 = vector.load %arg3[%c0_3, %c0_4] : memref<1x128xf32, #tpu.memory_space<vmem>>, vector<1x128xf32>
    %4 = vector.broadcast %3 : vector<1x128xf32> to vector<8x128xf32>
    %5 = arith.addf %2, %4 : vector<8x128xf32>
    %c0_5 = arith.constant 0 : index
    %c0_6 = arith.constant 0 : index
    %6 = vector.load %arg4[%c0_5, %c0_6] : memref<8x128xf32, #tpu.memory_space<vmem>>, vector<8x128xf32>
    tpu.vector_store %arg4[%c0_5, %c0_6], %5 {strides = array<i32>} : memref<8x128xf32, #tpu.memory_space<vmem>>, vector<8x128xf32>,
    return
  }
  func.func @transform_0(%arg0: i32) -> (i32, i32) {
    %c0_i32 = arith.constant 0 : i32
    %c0_i32_0 = arith.constant 0 : i32
    return %arg0, %c0_i32 : i32, i32
  }
  func.func @transform_1(%arg0: i32) -> (i32, i32) {
    %c0_i32 = arith.constant 0 : i32
    %c0_i32_0 = arith.constant 0 : i32
    %c0_i32_1 = arith.constant 0 : i32
    return %c0_i32, %c0_i32_0 : i32, i32
  }
  func.func @transform_2(%arg0: i32) -> (i32, i32) {
    %c0_i32 = arith.constant 0 : i32
    %c0_i32_0 = arith.constant 0 : i32
    %c0_i32_1 = arith.constant 0 : i32
    return %c0_i32, %c0_i32_0 : i32, i32
  }
  func.func @transform_3(%arg0: i32) -> (i32, i32) {
    %c0_i32 = arith.constant 0 : i32
    %c0_i32_0 = arith.constant 0 : i32
    return %arg0, %c0_i32 : i32, i32
  }
}

</mosaic_0001>

<bundles_post_ra>
// kernel: cifar10_model_forward.1
= control target key start
LH: loop header
LB: loop body
LE: loop exit
PB: predicated region body
PF: predicated region fallthrough
CT: control target
= control target key end

     0   :  { %8 = vsyncpa [#allocation3], 0  ;;  %s582_s12 = smov [#allocation2]   ;;  %s641_s0 = inlined_call_operand.vmem [shape: f32[8,768], index: 0, kind: input, shape index: {}]   ;;  %s642_s1 = inlined_call_operand.hbm [shape: f32[768,128], index: 1, kind: input, shape index: {}]   ;;  %s643_s2 = inlined_call_operand.vmem [shape: f32[1,128], index: 2, kind: input, shape index: {}]   ;;  %s644_s3 = inlined_call_operand.vmem [shape: f32[8,128], index: 3, kind: output, shape index: {}]  }
   0x1   :  { %s16_s13 = sshll.u32 %s582_s12, 4  ;;  %s558_s16 = scalar_lea.hbm %s642_s1, 12288  ;;  %s17_s13 = int_to_ptr.vmem [resolvable:$true] %s16_s13 }
   0x2   :  { %p559_p0 = scmp.ne.s32.totalorder %s642_s1, %s558_s16  ;;  %p562_p1 = scmp.lt.u32.totalorder %s558_s16, %s642_s1 }
   0x4   :  { %p564_p2 = pnand %p562_p1, %p559_p0 }
   0x6   :  { %567 = shalt.err (!%p564_p2)
}
   0x7   :  { %s568_s21 = scalar_lea.vmem %s17_s13, 12288  ;;  %p573_p4 = scmp.lt.s32.totalorder %s17_s13, %s17_s13 }
   0x8   :  { %p569_p3 = scmp.ne.s32.totalorder %s17_s13, %s568_s21  ;;  %p574_p5 = scmp.lt.s32.totalorder %s568_s21, %s568_s21 }
   0xa   :  { %p575_p6 = por %p574_p5, %p573_p4 }
   0xc   :  { %p576_p7 = pnand %p575_p6, %p569_p3 }
   0xe   :  { %579 = shalt.err (!%p576_p7)
}
   0xf   :  { %s583_s22 = smov 128   ;;  %s584_s23 = smov 8  }
  0x10   :  { %22 = dma.hbm_to_vmem [thread:$0]  %s642_s1, 12288, %s17_s13, [#allocation3], %s583_s22, %s583_s22, %s584_s23  }
  0x11   :  { %580 = dma.done.wait [#allocation3], 12288  }
  0x12   :  { %581 = vsyncadd [#allocation3], 4294955008  ;;  %v50_v0 = vld [vmem:[#allocation2 + $0x80] sm:$0xff]  ;;  %v51_v1 = vld [vmem:[#allocation2 + $0x88] sm:$0xff] }
  0x13   :  { %v34_v2 = vld [vmem:[#allocation2] sm:$0xff]  ;;  %v459_v3 = vpack.c.bf16 %v51_v1, %v50_v0  ;;  %v35_v4 = vld [vmem:[#allocation2 + $0x8] sm:$0xff]  ;;  %v52_v11 = vld [vmem:[#allocation2 + $0x90] sm:$0xff] }
  0x14   :  { %v82_v5 = vld [vmem:[#allocation2 + $0x180] sm:$0xff]  ;;  %v83_v6 = vld [vmem:[#allocation2 + $0x188] sm:$0xff]  ;;  %v461_v7 = vpack.c.bf16 %v35_v4, %v34_v2  ;;  %v53_v13 = vld [vmem:[#allocation2 + $0x98] sm:$0xff] }
  0x15   :  { %v491_v8 = vpack.c.bf16 %v83_v6, %v82_v5  ;;  %v66_v9 = vld [vmem:[#allocation2 + $0x100] sm:$0xff]  ;;  %v67_v10 = vld [vmem:[#allocation2 + $0x108] sm:$0xff]  ;;  %460 = vmatprep.subr.bf16.mxu0 %v459_v3  ;;  %v36_v14 = vld [vmem:[#allocation2 + $0x10] sm:$0xff]  ;;  %v463_v16 = vpack.c.bf16 %v53_v13, %v52_v11 }
  0x16   :  { %v493_v12 = vpack.c.bf16 %v67_v10, %v66_v9  ;;  %v37_v15 = vld [vmem:[#allocation2 + $0x18] sm:$0xff]  ;;  %462 = vmatpush3.bf16.msra.mxu0 %v461_v7  ;;  %v84_v18 = vld [vmem:[#allocation2 + $0x190] sm:$0xff]  ;;  %v54_v23 = vld [vmem:[#allocation2 + $0xa0] sm:$0xff] }
  0x17   :  { %492 = vmatprep.subr.bf16.mxu1 %v491_v8  ;;  %v465_v17 = vpack.c.bf16 %v37_v15, %v36_v14  ;;  %v85_v19 = vld [vmem:[#allocation2 + $0x198] sm:$0xff]  ;;  %v68_v20 = vld [vmem:[#allocation2 + $0x110] sm:$0xff]  ;;  %v55_v24 = vld [vmem:[#allocation2 + $0xa8] sm:$0xff]  ;;  %464 = vmatprep.subr.bf16.mxu0 %v463_v16 }
  0x18   :  { %494 = vmatpush3.bf16.msra.mxu1 %v493_v12  ;;  %v495_v21 = vpack.c.bf16 %v85_v19, %v84_v18  ;;  %v69_v22 = vld [vmem:[#allocation2 + $0x118] sm:$0xff]  ;;  %v467_v26 = vpack.c.bf16 %v55_v24, %v54_v23  ;;  %v38_v27 = vld [vmem:[#allocation2 + $0x20] sm:$0xff]  ;;  %v39_v28 = vld [vmem:[#allocation2 + $0x28] sm:$0xff] }
  0x19   :  { %v497_v25 = vpack.c.bf16 %v69_v22, %v68_v20  ;;  %v86_v29 = vld [vmem:[#allocation2 + $0x1a0] sm:$0xff]  ;;  %v87_v30 = vld [vmem:[#allocation2 + $0x1a8] sm:$0xff]  ;;  %v469_v33 = vpack.c.bf16 %v39_v28, %v38_v27  ;;  %v56_v35 = vld [vmem:[#allocation2 + $0xb0] sm:$0xff] }
  0x1a   :  { %496 = vmatprep.subr.bf16.mxu1 %v495_v21  ;;  %v70_v31 = vld [vmem:[#allocation2 + $0x120] sm:$0xff]  ;;  %v71_v32 = vld [vmem:[#allocation2 + $0x128] sm:$0xff]  ;;  %466 = vmatpush3.bf16.msra.mxu0 %v465_v17  ;;  %v499_v34 = vpack.c.bf16 %v87_v30, %v86_v29  ;;  %v57_v36 = vld [vmem:[#allocation2 + $0xb8] sm:$0xff] }
  0x1b   :  { %v40_v37 = vld [vmem:[#allocation2 + $0x30] sm:$0xff]  ;;  %468 = vmatprep.subr.bf16.mxu0 %v467_v26  ;;  %v501_v38 = vpack.c.bf16 %v71_v32, %v70_v31  ;;  %v471_v39 = vpack.c.bf16 %v57_v36, %v56_v35  ;;  %v41_v40 = vld [vmem:[#allocation2 + $0x38] sm:$0xff]  ;;  %v58_v46 = vld [vmem:[#allocation2 + $0xc0] sm:$0xff] }
  0x1c   :  { %498 = vmatpush3.bf16.msra.mxu1 %v497_v25  ;;  %v88_v41 = vld [vmem:[#allocation2 + $0x1b0] sm:$0xff]  ;;  %v89_v42 = vld [vmem:[#allocation2 + $0x1b8] sm:$0xff]  ;;  %v59_v47 = vld [vmem:[#allocation2 + $0xc8] sm:$0xff]  ;;  %v473_v48 = vpack.c.bf16 %v41_v40, %v40_v37 }
  0x1d   :  { %500 = vmatprep.subr.bf16.mxu1 %v499_v34  ;;  %v503_v43 = vpack.c.bf16 %v89_v42, %v88_v41  ;;  %v72_v44 = vld [vmem:[#allocation2 + $0x130] sm:$0xff]  ;;  %v73_v45 = vld [vmem:[#allocation2 + $0x138] sm:$0xff]  ;;  %v90_v49 = vld [vmem:[#allocation2 + $0x1c0] sm:$0xff]  ;;  %v475_v52 = vpack.c.bf16 %v59_v47, %v58_v46 }
  0x1e   :  { %470 = vmatpush3.bf16.msra.mxu0 %v469_v33  ;;  %v91_v50 = vld [vmem:[#allocation2 + $0x1c8] sm:$0xff]  ;;  %v505_v51 = vpack.c.bf16 %v73_v45, %v72_v44  ;;  %v42_v53 = vld [vmem:[#allocation2 + $0x40] sm:$0xff]  ;;  %v60_v58 = vld [vmem:[#allocation2 + $0xd0] sm:$0xff] }
  0x1f   :  { %472 = vmatprep.subr.bf16.mxu0 %v471_v39  ;;  %v43_v54 = vld [vmem:[#allocation2 + $0x48] sm:$0xff]  ;;  %v74_v55 = vld [vmem:[#allocation2 + $0x140] sm:$0xff]  ;;  %v507_v56 = vpack.c.bf16 %v91_v50, %v90_v49  ;;  %v61_v59 = vld [vmem:[#allocation2 + $0xd8] sm:$0xff] }
  0x20   :  { %502 = vmatpush3.bf16.msra.mxu1 %v501_v38  ;;  %v75_v57 = vld [vmem:[#allocation2 + $0x148] sm:$0xff]  ;;  %v92_v60 = vld [vmem:[#allocation2 + $0x1d0] sm:$0xff]  ;;  %v93_v61 = vld [vmem:[#allocation2 + $0x1d8] sm:$0xff]  ;;  %v477_v62 = vpack.c.bf16 %v43_v54, %v42_v53  ;;  %v479_v0 = vpack.c.bf16 %v61_v59, %v60_v58 }
  0x21   :  { %504 = vmatprep.subr.bf16.mxu1 %v503_v43  ;;  %v509_v63 = vpack.c.bf16 %v75_v57, %v74_v55  ;;  %v44_v1 = vld [vmem:[#allocation2 + $0x50] sm:$0xff]  ;;  %v45_v2 = vld [vmem:[#allocation2 + $0x58] sm:$0xff]  ;;  %v511_v4 = vpack.c.bf16 %v93_v61, %v92_v60  ;;  %v62_v6 = vld [vmem:[#allocation2 + $0xe0] sm:$0xff] }
  0x22   :  { %474 = vmatpush3.bf16.msra.mxu0 %v473_v48  ;;  %v76_v3 = vld [vmem:[#allocation2 + $0x150] sm:$0xff]  ;;  %v77_v5 = vld [vmem:[#allocation2 + $0x158] sm:$0xff]  ;;  %v63_v7 = vld [vmem:[#allocation2 + $0xe8] sm:$0xff]  ;;  %v481_v10 = vpack.c.bf16 %v45_v2, %v44_v1 }
  0x23   :  { %476 = vmatprep.subr.bf16.mxu0 %v475_v52  ;;  %v94_v8 = vld [vmem:[#allocation2 + $0x1e0] sm:$0xff]  ;;  %v95_v9 = vld [vmem:[#allocation2 + $0x1e8] sm:$0xff]  ;;  %v513_v13 = vpack.c.bf16 %v77_v5, %v76_v3  ;;  %v483_v14 = vpack.c.bf16 %v63_v7, %v62_v6  ;;  %v64_v19 = vld [vmem:[#allocation2 + $0xf0] sm:$0xff] }
  0x24   :  { %506 = vmatpush3.bf16.msra.mxu1 %v505_v51  ;;  %v46_v11 = vld [vmem:[#allocation2 + $0x60] sm:$0xff]  ;;  %v29_v12 = vld [vmem:[%s641_s0 + $0x8] sm:$0xff]  ;;  %v515_v18 = vpack.c.bf16 %v95_v9, %v94_v8  ;;  %v65_v20 = vld [vmem:[#allocation2 + $0xf8] sm:$0xff] }
  0x25   :  { %508 = vmatprep.subr.bf16.mxu1 %v507_v56  ;;  %v47_v15 = vld [vmem:[#allocation2 + $0x68] sm:$0xff]  ;;  %v78_v16 = vld [vmem:[#allocation2 + $0x160] sm:$0xff]  ;;  %201 = vmatprep.mubr.f32.mxu0 %v29_v12  ;;  %v31_v21 = vld [vmem:[%s641_s0 + $0x18] sm:$0xff]  ;;  %v487_v26 = vpack.c.bf16 %v65_v20, %v64_v19 }
  0x26   :  { %478 = vmatpush3.bf16.msra.mxu0 %v477_v62  ;;  %v79_v17 = vld [vmem:[#allocation2 + $0x168] sm:$0xff]  ;;  %v96_v22 = vld [vmem:[#allocation2 + $0x1f0] sm:$0xff]  ;;  %v97_v23 = vld [vmem:[#allocation2 + $0x1f8] sm:$0xff]  ;;  %271 = vmatprep.mubr.f32.mxu1 %v31_v21  ;;  %v485_v24 = vpack.c.bf16 %v47_v15, %v46_v11 }
  0x27   :  { %480 = vmatprep.subr.bf16.mxu0 %v479_v0  ;;  %v517_v25 = vpack.c.bf16 %v79_v17, %v78_v16  ;;  %v48_v27 = vld [vmem:[#allocation2 + $0x70] sm:$0xff]  ;;  %v49_v28 = vld [vmem:[#allocation2 + $0x78] sm:$0xff]  ;;  %v519_v30 = vpack.c.bf16 %v97_v23, %v96_v22  ;;  %v114_v32 = vld [vmem:[#allocation2 + $0x280] sm:$0xff] }
  0x28   :  { %510 = vmatpush3.bf16.msra.mxu1 %v509_v63  ;;  %v80_v29 = vld [vmem:[#allocation2 + $0x170] sm:$0xff]  ;;  %v81_v31 = vld [vmem:[#allocation2 + $0x178] sm:$0xff]  ;;  %v115_v33 = vld [vmem:[#allocation2 + $0x288] sm:$0xff]  ;;  %v489_v34 = vpack.c.bf16 %v49_v28, %v48_v27 }
  0x29   :  { %512 = vmatprep.subr.bf16.mxu1 %v511_v4  ;;  %v521_v35 = vpack.c.bf16 %v81_v31, %v80_v29  ;;  %v523_v36 = vpack.c.bf16 %v115_v33, %v114_v32  ;;  %v98_v37 = vld [vmem:[#allocation2 + $0x200] sm:$0xff]  ;;  %v99_v38 = vld [vmem:[#allocation2 + $0x208] sm:$0xff]  ;;  %v116_v39 = vld [vmem:[#allocation2 + $0x290] sm:$0xff] }
  0x2a   :  { %482 = vmatpush3.bf16.msra.mxu0 %v481_v10  ;;  %v117_v40 = vld [vmem:[#allocation2 + $0x298] sm:$0xff]  ;;  %v28_v41 = vld [vmem:[%s641_s0] sm:$0xff]  ;;  %v525_v42 = vpack.c.bf16 %v99_v38, %v98_v37  ;;  %v30_v43 = vld [vmem:[%s641_s0 + $0x10] sm:$0xff] }
  0x2b   :  { %484 = vmatprep.subr.bf16.mxu0 %v483_v14  ;;  %v527_v44 = vpack.c.bf16 %v117_v40, %v116_v39  ;;  %v100_v45 = vld [vmem:[#allocation2 + $0x210] sm:$0xff]  ;;  %v101_v46 = vld [vmem:[#allocation2 + $0x218] sm:$0xff]  ;;  %v118_v47 = vld [vmem:[#allocation2 + $0x2a0] sm:$0xff] }
  0x2c   :  { %514 = vmatpush3.bf16.msra.mxu1 %v513_v13  ;;  %v119_v48 = vld [vmem:[#allocation2 + $0x2a8] sm:$0xff]  ;;  %v529_v50 = vpack.c.bf16 %v101_v46, %v100_v45  ;;  %v102_v52 = vld [vmem:[#allocation2 + $0x220] sm:$0xff]  ;;  %v120_v54 = vld [vmem:[#allocation2 + $0x2b0] sm:$0xff] }
  0x2d   :  { %516 = vmatprep.subr.bf16.mxu1 %v515_v18  ;;  %v33_v49 = vld [vmem:[%s641_s0 + $0x28] sm:$0xff]  ;;  %v531_v51 = vpack.c.bf16 %v119_v48, %v118_v47  ;;  %v121_v55 = vld [vmem:[#allocation2 + $0x2b8] sm:$0xff]  ;;  %v104_v58 = vld [vmem:[#allocation2 + $0x230] sm:$0xff] }
  0x2e   :  { %486 = vmatpush3.bf16.msra.mxu0 %v485_v24  ;;  %v103_v53 = vld [vmem:[#allocation2 + $0x228] sm:$0xff]  ;;  %v535_v57 = vpack.c.bf16 %v121_v55, %v120_v54  ;;  %v105_v59 = vld [vmem:[#allocation2 + $0x238] sm:$0xff]  ;;  %v122_v60 = vld [vmem:[#allocation2 + $0x2c0] sm:$0xff] }
  0x2f   :  { %488 = vmatprep.subr.bf16.mxu0 %v487_v26  ;;  %v533_v56 = vpack.c.bf16 %v103_v53, %v102_v52  ;;  %v123_v61 = vld [vmem:[#allocation2 + $0x2c8] sm:$0xff]  ;;  %v537_v62 = vpack.c.bf16 %v105_v59, %v104_v58  ;;  %v106_v0 = vld [vmem:[#allocation2 + $0x240] sm:$0xff]  ;;  %v124_v2 = vld [vmem:[#allocation2 + $0x2d0] sm:$0xff] }
  0x30   :  { %518 = vmatpush3.bf16.msra.mxu1 %v517_v25  ;;  %v539_v63 = vpack.c.bf16 %v123_v61, %v122_v60  ;;  %v107_v1 = vld [vmem:[#allocation2 + $0x248] sm:$0xff]  ;;  %v125_v3 = vld [vmem:[#allocation2 + $0x2d8] sm:$0xff]  ;;  %v108_v6 = vld [vmem:[#allocation2 + $0x250] sm:$0xff] }
  0x31   :  { %520 = vmatprep.subr.bf16.mxu1 %v519_v30  ;;  %v541_v4 = vpack.c.bf16 %v107_v1, %v106_v0  ;;  %v543_v5 = vpack.c.bf16 %v125_v3, %v124_v2  ;;  %v109_v7 = vld [vmem:[#allocation2 + $0x258] sm:$0xff]  ;;  %v126_v8 = vld [vmem:[#allocation2 + $0x2e0] sm:$0xff]  ;;  %v127_v9 = vld [vmem:[#allocation2 + $0x2e8] sm:$0xff] }
  0x32   :  { %490 = vmatpush3.bf16.msra.mxu0 %v489_v34  ;;  %v545_v10 = vpack.c.bf16 %v109_v7, %v108_v6  ;;  %v547_v11 = vpack.c.bf16 %v127_v9, %v126_v8  ;;  %v110_v12 = vld [vmem:[#allocation2 + $0x260] sm:$0xff]  ;;  %v111_v13 = vld [vmem:[#allocation2 + $0x268] sm:$0xff]  ;;  %v128_v14 = vld [vmem:[#allocation2 + $0x2f0] sm:$0xff] }
  0x33   :  { %524 = vmatprep.subr.bf16.mxu0 %v523_v36  ;;  %v129_v15 = vld [vmem:[#allocation2 + $0x2f8] sm:$0xff]  ;;  %v549_v16 = vpack.c.bf16 %v111_v13, %v110_v12  ;;  %v112_v18 = vld [vmem:[#allocation2 + $0x270] sm:$0xff]  ;;  %v32_v21 = vld [vmem:[%s641_s0 + $0x20] sm:$0xff] }
  0x34   :  { %522 = vmatpush3.bf16.msra.mxu1 %v521_v35  ;;  %v551_v17 = vpack.c.bf16 %v129_v15, %v128_v14  ;;  %v113_v19 = vld [vmem:[#allocation2 + $0x278] sm:$0xff]  ;;  %v353_v23 = vld [vmem:[%s643_s2] ss:$0 sm:$0xff] }
  0x35   :  { %202 = vmatmul.mubr.f32.vlgmr.msra.gmra.mrb[0].mxu0 %v28_v41  ;;  %v553_v20 = vpack.c.bf16 %v113_v19, %v112_v18 }
  0x36   :  { %526 = vmatpush3.bf16.msra.mxu0 %v525_v42  ;;  %341 = vmatprep.mubr.f32.mxu0 %v33_v49 }
  0x37   :  { %272 = vmatmul.mubr.f32.vlgmr.msra.gmra.mrb[0].mxu1 %v30_v43  ;;  %528 = vmatprep.subr.bf16.mxu0 %v527_v44 }
  0x3a   :  { %530 = vmatpush3.bf16.msra.mxu0 %v529_v50 }
  0x3b   :  { %532 = vmatprep.subr.bf16.mxu0 %v531_v51 }
  0x3e   :  { %534 = vmatpush3.bf16.msra.mxu0 %v533_v56 }
  0x3f   :  { %536 = vmatprep.subr.bf16.mxu0 %v535_v57 }
  0x42   :  { %538 = vmatpush3.bf16.msra.mxu0 %v537_v62 }
  0x43   :  { %540 = vmatprep.subr.bf16.mxu0 %v539_v63 }
  0x46   :  { %542 = vmatpush3.bf16.msra.mxu0 %v541_v4 }
  0x47   :  { %544 = vmatprep.subr.bf16.mxu0 %v543_v5 }
  0x4a   :  { %546 = vmatpush3.bf16.msra.mxu0 %v545_v10 }
  0x4b   :  { %548 = vmatprep.subr.bf16.mxu0 %v547_v11 }
  0x4e   :  { %550 = vmatpush3.bf16.msra.mxu0 %v549_v16 }
  0x4f   :  { %552 = vmatprep.subr.bf16.mxu0 %v551_v17 }
  0x52   :  { %554 = vmatpush3.bf16.msra.mxu0 %v553_v20 }
  0x55   :  { %342 = vmatmul.mubr.f32.vlgmr.msra.gmra.mrb[2].mxu0 %v32_v21 }
 0x108   :  { %v386_v22 = vpop.f32.mrb[0].mxu0 }
 0x109   :  { %v387_v24 = vpop.f32.mrb[1].mxu0 }
 0x10a   :  { %v421_v25 = vpop.f32.mrb[0].mxu1  ;;  %v388_v26 = vadd.f32 %v387_v24, %v386_v22 }
 0x10b   :  { %v422_v27 = vpop.f32.mrb[1].mxu1 }
 0x10c   :  { %v423_v28 = vadd.f32 %v422_v27, %v421_v25  ;;  %v204_v29 = vadd.f32 %v388_v26, %v353_v23 }
 0x10e   :  { %v274_v30 = vadd.f32 %v423_v28, %v204_v29 }
 0x128   :  { %v456_v31 = vpop.f32.mrb[2].mxu0 }
 0x129   :  { %v457_v32 = vpop.f32.mrb[3].mxu0 }
 0x12a   :  { %v458_v33 = vadd.f32 %v457_v32, %v456_v31 }
 0x12c   :  { %v344_v34 = vadd.f32 %v458_v33, %v274_v30 }
 0x12e   :  { %347 = vst [vmem:[%s644_s3] sm:$0xff] %v344_v34 }
 0x12f   :  { %352 = vsyncpa [#allocation3], 1 }

</bundles_post_ra>
